<compile_context>
chip_gen: v6e
topology: v6e:2x2x1
jax: 0.10.0
libtpu: 0.0.40
codegen_flags: <defaults>
</compile_context>

<pallas_src>
import functools

import jax
import jax.numpy as jnp
from jax.experimental import pallas as pl
from jax.experimental.pallas import tpu as pltpu


def mu_sigma_kernel(r_ref, w1_ref, b1_ref, w23_ref, b23_ref, out_ref):
    """One row-tile: hidden = relu(r@W1+b1); out = [mu | 0.1+0.9*sigmoid(.)]."""
    z2 = out_ref.shape[-1]
    z_dim = z2 // 2

    r = r_ref[...]                                           # (TB, r_dim)

    # r_to_hidden + ReLU (accumulate in f32, elementwise math in f32).
    h = jnp.dot(r, w1_ref[...], preferred_element_type=jnp.float32)
    h = jnp.maximum(h + b1_ref[...], 0.0)                    # (TB, r_dim) f32
    h = h.astype(w23_ref.dtype)                              # MXU input dtype

    # Fused mu/sigma head: single wide matmul -> (TB, 2*z_dim).
    y = jnp.dot(h, w23_ref[...], preferred_element_type=jnp.float32)
    y = y + b23_ref[...]

    # Apply per-half epilogue without slicing the lane-dense slab:
    #   lanes [0, z_dim)      -> mu  (identity)
    #   lanes [z_dim, 2*z_dim)-> 0.1 + 0.9 * sigmoid(.)
    col = jax.lax.broadcasted_iota(jnp.int32, y.shape, dimension=1)
    sig = 0.1 + 0.9 * jax.nn.sigmoid(y)                      # EUP, f32
    out = jnp.where(col >= z_dim, sig, y)

    out_ref[...] = out.astype(out_ref.dtype)


def _round_up(x, m):
    return ((x + m - 1) // m) * m


@functools.partial(jax.jit, static_argnames=("block_b", "compute_dtype"))
def mu_sigma_encoder(r, w1, b1, w2, b2, w3, b3, *, block_b=None,
                     compute_dtype=jnp.float32):
    """r: (B, r_dim); w1: (r_dim, r_dim); w2/w3: (r_dim, z_dim); b*: (1, dim).

    Returns (mu, sigma), each (B, z_dim) float32.
    """
    B, r_dim = r.shape
    z_dim = w2.shape[1]
    z2 = 2 * z_dim

    # Pack the two heads into one wide weight / bias (fused head matmul).
    w23 = jnp.concatenate([w2, w3], axis=1).astype(compute_dtype)   # (r_dim, 2z)
    b23 = jnp.concatenate(
        [b2.reshape(1, z_dim), b3.reshape(1, z_dim)], axis=1
    ).astype(jnp.float32)                                           # (1, 2z)
    w1c = w1.astype(compute_dtype)
    b1c = b1.reshape(1, r_dim).astype(jnp.float32)
    rc = r.astype(compute_dtype)

    # Row-tile selection: big enough to pipeline well, multiple of 8, and
    # sized so the VMEM working set (resident weights + double-buffered
    # r/out tiles) stays comfortably under the 30 MiB cap (v7x-safe).
    in_bytes = jnp.dtype(compute_dtype).itemsize
    if block_b is None:
        block_b = max(8, min(512, _round_up(B, 8)))

    vmem_cap = 30 << 20
    def footprint(tb):
        w_bytes = 2 * (r_dim * r_dim + r_dim * z2) * in_bytes       # resident W
        b_bytes = 2 * (r_dim + z2) * 4                              # biases
        io_bytes = 2 * tb * r_dim * in_bytes + 2 * tb * z2 * 4      # dbl-buffered
        return w_bytes + b_bytes + io_bytes
    while block_b > 8 and 2 * footprint(block_b) > vmem_cap:
        block_b //= 2
    block_b = max(8, _round_up(block_b, 8))
    vmem_limit = int(min(max(4 * footprint(block_b), 8 << 20), vmem_cap))

    grid_b = pl.cdiv(B, block_b)

    out = pl.pallas_call(
        mu_sigma_kernel,
        out_shape=jax.ShapeDtypeStruct((B, z2), jnp.float32),
        grid=(grid_b,),
        in_specs=[
            # Row-tiled activations (pipelined over the batch grid axis).
            pl.BlockSpec((block_b, r_dim), lambda i: (i, 0)),
            # Weights / biases: full-array blocks, constant index_map ->
            # VMEM-resident across all grid steps.
            pl.BlockSpec((r_dim, r_dim), lambda i: (0, 0)),
            pl.BlockSpec((1, r_dim), lambda i: (0, 0)),
            pl.BlockSpec((r_dim, z2), lambda i: (0, 0)),
            pl.BlockSpec((1, z2), lambda i: (0, 0)),
        ],
        # Single lane-dense output slab: [mu | sigma].
        out_specs=pl.BlockSpec((block_b, z2), lambda i: (i, 0)),
        compiler_params=pltpu.CompilerParams(
            dimension_semantics=("parallel",),   # shards rows across TCs on v7x
            vmem_limit_bytes=vmem_limit,
        ),
    )(rc, w1c, b1c, w23, b23)

    mu = out[:, :z_dim]
    sigma = out[:, z_dim:]
    return mu, sigma


def _init_linear(key, in_dim, out_dim):
    """Deterministic PyTorch-style init: U(-1/sqrt(in_dim), 1/sqrt(in_dim))."""
    kw, kb = jax.random.split(key)
    bound = 1.0 / jnp.sqrt(in_dim)
    # Stored as (in_dim, out_dim) so the kernel computes x @ W.
    w = jax.random.uniform(kw, (in_dim, out_dim), jnp.float32, -bound, bound)
    b = jax.random.uniform(kb, (1, out_dim), jnp.float32, -bound, bound)
    return w, b


def _reference(r, w1, b1, w2, b2, w3, b3):
    h = jnp.maximum(r @ w1 + b1, 0.0)
    mu = h @ w2 + b2
    sigma = 0.1 + 0.9 * jax.nn.sigmoid(h @ w3 + b3)
    return mu, sigma


if __name__ == "__main__":
    key = jax.random.PRNGKey(0)
    k_r, k_rbig, k1, k2, k3 = jax.random.split(key, 5)

    r_dim = 32
    z_dim = 16

    w1, b1 = _init_linear(k1, r_dim, r_dim)
    w2, b2 = _init_linear(k2, r_dim, z_dim)
    w3, b3 = _init_linear(k3, r_dim, z_dim)

    # Small shape matching the module's forward (single grid step).
    batch = 8
    r = jax.random.normal(k_r, (batch, r_dim), jnp.float32)
    mu, sigma = mu_sigma_encoder(r, w1, b1, w2, b2, w3, b3)
    jax.block_until_ready((mu, sigma))

    mu_ref, sigma_ref = _reference(r, w1, b1, w2, b2, w3, b3)
    assert mu.shape == (batch, z_dim) and sigma.shape == (batch, z_dim)
    assert jnp.allclose(mu, mu_ref, atol=1e-4, rtol=1e-5)
    assert jnp.allclose(sigma, sigma_ref, atol=1e-4, rtol=1e-5)
    assert bool(jnp.all(sigma >= 0.1 - 1e-6)) and bool(jnp.all(sigma <= 1.0 + 1e-6))

    # Larger batch: exercises the multi-step (pipelined, parallel) row grid.
    batch_big = 1024
    r_big = jax.random.normal(k_rbig, (batch_big, r_dim), jnp.float32)
    mu_b, sigma_b = mu_sigma_encoder(r_big, w1, b1, w2, b2, w3, b3)
    jax.block_until_ready((mu_b, sigma_b))

    mu_bref, sigma_bref = _reference(r_big, w1, b1, w2, b2, w3, b3)
    assert jnp.allclose(mu_b, mu_bref, atol=1e-4, rtol=1e-5)
    assert jnp.allclose(sigma_b, sigma_bref, atol=1e-4, rtol=1e-5)

    print("KERNEL_OK")
</pallas_src>

<mosaic_0001>
module attributes {stable_mosaic.version = 11 : i64} {
  func.func @mu_sigma_kernel(%arg0: i32, %arg1: memref<8x32xf32, #tpu.memory_space<vmem>>, %arg2: memref<32x32xf32, #tpu.memory_space<vmem>>, %arg3: memref<1x32xf32, #tpu.memory_space<vmem>>, %arg4: memref<32x32xf32, #tpu.memory_space<vmem>>, %arg5: memref<1x32xf32, #tpu.memory_space<vmem>>, %arg6: memref<8x32xf32, #tpu.memory_space<vmem>>) attributes {dimension_semantics = [#tpu.dimension_semantics<parallel>], iteration_bounds = array<i64: 1>, scalar_prefetch = 0 : i64, scratch_operands = 0 : i64, tpu.core_type = #tpu.core_type<tc>, window_params = [{transform_indices = @transform_0, window_bounds = array<i64: 8, 32>}, {pipeline_mode = #tpu.pipeline_mode<synchronous>, transform_indices = @transform_1, window_bounds = array<i64: 32, 32>}, {pipeline_mode = #tpu.pipeline_mode<synchronous>, transform_indices = @transform_2, window_bounds = array<i64: 1, 32>}, {pipeline_mode = #tpu.pipeline_mode<synchronous>, transform_indices = @transform_3, window_bounds = array<i64: 32, 32>}, {pipeline_mode = #tpu.pipeline_mode<synchronous>, transform_indices = @transform_4, window_bounds = array<i64: 1, 32>}, {transform_indices = @transform_5, window_bounds = array<i64: 8, 32>}]} {
    %c0 = arith.constant 0 : index
    %c0_0 = arith.constant 0 : index
    %0 = vector.load %arg1[%c0, %c0_0] : memref<8x32xf32, #tpu.memory_space<vmem>>, vector<8x32xf32>
    %c0_1 = arith.constant 0 : index
    %c0_2 = arith.constant 0 : index
    %1 = vector.load %arg2[%c0_1, %c0_2] : memref<32x32xf32, #tpu.memory_space<vmem>>, vector<32x32xf32>
    %cst = arith.constant dense<0.000000e+00> : vector<8x32xf32>
    %2 = tpu.matmul %0, %1, %cst {dimension_numbers = #tpu.dot_dimension_numbers<[1], [0], [0], [1], [0, 0, 1, 1], [], []>} : vector<8x32xf32>, vector<32x32xf32>, vector<8x32xf32> -> vector<8x32xf32>
    %c0_3 = arith.constant 0 : index
    %c0_4 = arith.constant 0 : index
    %3 = vector.load %arg3[%c0_3, %c0_4] : memref<1x32xf32, #tpu.memory_space<vmem>>, vector<1x32xf32>
    %4 = vector.broadcast %3 : vector<1x32xf32> to vector<8x32xf32>
    %5 = arith.addf %2, %4 : vector<8x32xf32>
    %cst_5 = arith.constant 0.000000e+00 : f32
    %6 = vector.broadcast %cst_5 : f32 to vector<8x32xf32>
    %7 = arith.maximumf %5, %6 : vector<8x32xf32>
    %c0_6 = arith.constant 0 : index
    %c0_7 = arith.constant 0 : index
    %8 = vector.load %arg4[%c0_6, %c0_7] : memref<32x32xf32, #tpu.memory_space<vmem>>, vector<32x32xf32>
    %cst_8 = arith.constant dense<0.000000e+00> : vector<8x32xf32>
    %9 = tpu.matmul %7, %8, %cst_8 {dimension_numbers = #tpu.dot_dimension_numbers<[1], [0], [0], [1], [0, 0, 1, 1], [], []>} : vector<8x32xf32>, vector<32x32xf32>, vector<8x32xf32> -> vector<8x32xf32>
    %c0_9 = arith.constant 0 : index
    %c0_10 = arith.constant 0 : index
    %10 = vector.load %arg5[%c0_9, %c0_10] : memref<1x32xf32, #tpu.memory_space<vmem>>, vector<1x32xf32>
    %11 = vector.broadcast %10 : vector<1x32xf32> to vector<8x32xf32>
    %12 = arith.addf %9, %11 : vector<8x32xf32>
    %13 = tpu.iota {dimensions = array<i32: 1>} : vector<8x32xi32>
    %14 = arith.negf %12 : vector<8x32xf32>
    %15 = math.exp %14 : vector<8x32xf32>
    %cst_11 = arith.constant 1.000000e+00 : f32
    %16 = vector.broadcast %cst_11 : f32 to vector<8x32xf32>
    %17 = arith.addf %16, %15 : vector<8x32xf32>
    %18 = arith.divf %16, %17 : vector<8x32xf32>
    %cst_12 = arith.constant 0.899999976 : f32
    %19 = vector.broadcast %cst_12 : f32 to vector<8x32xf32>
    %20 = arith.mulf %19, %18 : vector<8x32xf32>
    %cst_13 = arith.constant 1.000000e-01 : f32
    %21 = vector.broadcast %cst_13 : f32 to vector<8x32xf32>
    %22 = arith.addf %21, %20 : vector<8x32xf32>
    %c16_i32 = arith.constant 16 : i32
    %23 = vector.broadcast %c16_i32 : i32 to vector<8x32xi32>
    %24 = arith.cmpi sge, %13, %23 : vector<8x32xi32>
    %25 = arith.select %24, %22, %12 : vector<8x32xi1>, vector<8x32xf32>
    %c0_14 = arith.constant 0 : index
    %c0_15 = arith.constant 0 : index
    %26 = vector.load %arg6[%c0_14, %c0_15] : memref<8x32xf32, #tpu.memory_space<vmem>>, vector<8x32xf32>
    tpu.vector_store %arg6[%c0_14, %c0_15], %25 {strides = array<i32>} : memref<8x32xf32, #tpu.memory_space<vmem>>, vector<8x32xf32>,
    return
  }
  func.func @transform_0(%arg0: i32) -> (i32, i32) {
    %c0_i32 = arith.constant 0 : i32
    %c0_i32_0 = arith.constant 0 : i32
    return %arg0, %c0_i32 : i32, i32
  }
  func.func @transform_1(%arg0: i32) -> (i32, i32) {
    %c0_i32 = arith.constant 0 : i32
    %c0_i32_0 = arith.constant 0 : i32
    %c0_i32_1 = arith.constant 0 : i32
    return %c0_i32, %c0_i32_0 : i32, i32
  }
  func.func @transform_2(%arg0: i32) -> (i32, i32) {
    %c0_i32 = arith.constant 0 : i32
    %c0_i32_0 = arith.constant 0 : i32
    %c0_i32_1 = arith.constant 0 : i32
    return %c0_i32, %c0_i32_0 : i32, i32
  }
  func.func @transform_3(%arg0: i32) -> (i32, i32) {
    %c0_i32 = arith.constant 0 : i32
    %c0_i32_0 = arith.constant 0 : i32
    %c0_i32_1 = arith.constant 0 : i32
    return %c0_i32, %c0_i32_0 : i32, i32
  }
  func.func @transform_4(%arg0: i32) -> (i32, i32) {
    %c0_i32 = arith.constant 0 : i32
    %c0_i32_0 = arith.constant 0 : i32
    %c0_i32_1 = arith.constant 0 : i32
    return %c0_i32, %c0_i32_0 : i32, i32
  }
  func.func @transform_5(%arg0: i32) -> (i32, i32) {
    %c0_i32 = arith.constant 0 : i32
    %c0_i32_0 = arith.constant 0 : i32
    return %arg0, %c0_i32 : i32, i32
  }
}

</mosaic_0001>

<bundles_post_ra>
// kernel: mu_sigma_encoder.1
= control target key start
LH: loop header
LB: loop body
LE: loop exit
PB: predicated region body
PF: predicated region fallthrough
CT: control target
= control target key end

     0   :  { %v251_v0 = vmov 0.0   ;;  %vm252_vm0 = vmmov 0   ;;  %vm32_vm1 = vcmask 261120   ;;  %v191_v22 = vlaneseq  ;;  %s322_s1 = inlined_call_operand.vmem [shape: f32[32,32], index: 1, kind: input, shape index: {}]   ;;  %s323_s3 = inlined_call_operand.vmem [shape: f32[32,32], index: 3, kind: input, shape index: {}]   ;;  %s324_s0 = inlined_call_operand.vmem [shape: f32[8,32], index: 0, kind: input, shape index: {}]   ;;  %s325_s2 = inlined_call_operand.vmem [shape: f32[1,32], index: 2, kind: input, shape index: {}]   ;;  %s326_s4 = inlined_call_operand.vmem [shape: f32[1,32], index: 4, kind: input, shape index: {}]   ;;  %s327_s5 = inlined_call_operand.vmem [shape: f32[8,32], index: 5, kind: output, shape index: {}]  }
   0x1   :  { %223 = vmatprep.subr.mxu0 %v251_v0  ;;  %v24_v1 = vld [vmem:[%s322_s1 + $0x18] sm:$0xff]  ;;  %v23_v2 = vld [vmem:[%s322_s1 + $0x10] sm:$0xff]  ;;  %231 = vmatprep.mubr.msk.f32.mxu0 %vm252_vm0, %v251_v0  ;;  %v22_v4 = vld [vmem:[%s322_s1 + $0x8] sm:$0xff] }
   0x2   :  { %224 = vmatpush3.msra.mxu0 %v24_v1  ;;  %234 = vmatprep.subr.mxu1 %v251_v0  ;;  %v110_v3 = vld [vmem:[%s323_s3 + $0x18] sm:$0xff]  ;;  %v21_v5 = vld [vmem:[%s322_s1] sm:$0xff]  ;;  %v109_v7 = vld [vmem:[%s323_s3 + $0x10] sm:$0xff]  ;;  %v192_v23 = vand.u32 127, %v191_v22 }
   0x3   :  { %225 = vmatprep.subr.mxu0 %v251_v0  ;;  %235 = vmatpush3.msra.mxu1 %v110_v3  ;;  %v20_v6 = vld [vmem:[%s324_s0] sm:$0xff]  ;;  %v108_v8 = vld [vmem:[%s323_s3 + $0x8] sm:$0xff] }
   0x4   :  { %226 = vmatpush3.msra.mxu0 %v23_v2  ;;  %236 = vmatprep.subr.mxu1 %v251_v0  ;;  %v107_v9 = vld [vmem:[%s323_s3] sm:$0xff]  ;;  %vm201_vm2 = vcmp.ge.s32.totalorder %v192_v23, 16 }
   0x5   :  { %227 = vmatprep.subr.mxu0 %v251_v0  ;;  %242 = vmatprep.mubr.msk.f32.mxu1 %vm252_vm0, %v251_v0  ;;  %v208_v10 = vld [vmem:[%s325_s2] ss:$0 sm:$0xff] }
   0x6   :  { %228 = vmatpush3.msra.mxu0 %v22_v4  ;;  %237 = vmatpush3.msra.mxu1 %v109_v7  ;;  %v210_v15 = vld [vmem:[%s326_s4] ss:$0 sm:$0xff] }
   0x7   :  { %229 = vmatprep.subr.mxu0 %v251_v0  ;;  %238 = vmatprep.subr.mxu1 %v251_v0 }
   0x8   :  { %230 = vmatpush3.msra.mxu0 %v21_v5  ;;  %239 = vmatpush3.msra.mxu1 %v108_v8 }
   0x9   :  { %232 = vmatmul.mubr.msk.f32.vlgmr.msra.gmra.mxu0 %vm32_vm1, %v20_v6  ;;  %240 = vmatprep.subr.mxu1 %v251_v0 }
   0xa   :  { %241 = vmatpush3.msra.mxu1 %v107_v9 }
  0xc9   :  { %v102_v11 = vpop.f32.mrf.mxu0 }
  0xca   :  { %v103_v12 = vadd.f32 %v208_v10, %v102_v11 }
  0xcb   :  { %v233_v13 = vpop.f32.mrf.mxu0 }
  0xcc   :  { %v106_v14 = vmax.f32 %v103_v12, 0.0 }
  0xce   :  { %243 = vmatmul.mubr.msk.f32.vlgmr.msra.gmra.mxu1 %vm32_vm1, %v106_v14 }
 0x18e   :  { %v187_v16 = vpop.f32.mrf.mxu1 }
 0x18f   :  { %v188_v17 = vadd.f32 %v210_v15, %v187_v16 }
 0x190   :  { %v244_v18 = vpop.f32.mrf.mxu1 }
 0x191   :  { %v212_v19 = vmul.f32 -1.442695, %v188_v17 }
 0x193   :  { %247 = vpow2.f32 %v212_v19 }
 0x1a0   :  { %v248_v20 = vpop.eup %247 }
 0x1a1   :  { %v196_v21 = vadd.f32 1.0, %v248_v20 }
 0x1a3   :  { %249 = vrcp.f32 %v196_v21 }
 0x1b0   :  { %v250_v24 = vpop.eup %249 }
 0x1b1   :  { %v199_v25 = vmul.f32 0.9, %v250_v24 }
 0x1b3   :  { %v200_v26 = vadd.f32 0.1, %v199_v25 }
 0x1b5   :  { %v202_v27 = vsel %vm201_vm2, %v200_v26, %v188_v17 }
 0x1b6   :  { %203 = vst.msk [vmem:[%s327_s5] sm:$0xff] %vm32_vm1, %v202_v27 }

</bundles_post_ra>
